<compile_context>
chip_gen: v6e
topology: v6e:2x2x1
jax: 0.10.0
libtpu: 0.0.40
codegen_flags: <defaults>
</compile_context>

<pallas_src>
import math
import functools
from typing import NamedTuple

import jax
import jax.numpy as jnp
from jax.experimental import pallas as pl
from jax.experimental.pallas import tpu as pltpu


def _round_up(x, m):
    return (x + m - 1) // m * m


class _Plan(NamedTuple):
    B_pad: int
    E_pad: int
    C_pad: int
    tb: int
    tc: int
    vmem_limit: int
    has_pad: bool


def make_aam_plan(batch, embedding_size, num_class, emb_dtype=jnp.float32):
    """Pick padded shapes / tile sizes once (hoist out of the training step)."""
    E_pad = _round_up(embedding_size, 128)

    # Batch tile sized so nb == 1 for typical batches (classifier weights are
    # then streamed from HBM exactly once per call); multiple of 16 rows to
    # match the bf16 sublane packing of the normalized-embedding scratch.
    # TODO(synk): on v7x, when compute-bound (small C), prefer nb >= 2 so the
    # "parallel" batch axis spans both TensorCores.
    B16 = _round_up(max(batch, 1), 16)
    tb = B16 if B16 <= 512 else 256
    B_pad = _round_up(B16, tb)

    # Generation-aware VMEM budget: v5e/v6e have 128 MiB, v7x has 64 MiB.
    try:
        vmem_cap = pltpu.get_tpu_info().vmem_capacity_bytes
    except Exception:  # pragma: no cover - conservative fallback
        vmem_cap = 64 * 1024 * 1024
    if vmem_cap >= 100 * 1024 * 1024:
        budget, vmem_limit = 20 * 1024 * 1024, 64 * 1024 * 1024
    else:
        budget, vmem_limit = 10 * 1024 * 1024, 32 * 1024 * 1024

    e_bytes = jnp.dtype(emb_dtype).itemsize
    C_pad128 = _round_up(num_class, 128)

    def vmem_cost(tc_):
        return (2 * tb * E_pad * e_bytes      # embedding double buffer
                + tb * E_pad * 2              # bf16 normalized-embedding scratch
                + 2 * E_pad * tc_ * 2         # bf16 weight double buffer
                + 6 * tb * tc_ * 4)           # in-kernel f32 (tb, tc) temporaries

    tc = 128
    while (tc * 2 <= 2048 and tc * 2 <= C_pad128
           and _round_up(num_class, tc * 2) - C_pad128 <= max(C_pad128 // 8, 0)
           and vmem_cost(tc * 2) <= budget):
        tc *= 2
    C_pad = _round_up(num_class, tc)
    return _Plan(B_pad, E_pad, C_pad, tb, tc, vmem_limit, C_pad != num_class)


def prepare_aam_weights(weights, plan):
    """Transpose/pad/cast the (C, E) classifier once, outside the step function.

    Returns the (E_pad, C_pad) bf16 weight matrix and the (1, C_pad) additive
    padding-bias row (0 for real classes, -1e30 for padded columns).
    """
    C, E = weights.shape
    w_t = jnp.pad(jnp.transpose(weights).astype(jnp.bfloat16),
                  ((0, plan.E_pad - E), (0, plan.C_pad - C)))
    col = jnp.arange(plan.C_pad, dtype=jnp.int32)
    pad_bias = jnp.where(col < C, 0.0, -1e30).astype(jnp.float32).reshape(1, plan.C_pad)
    return w_t, pad_bias


def _aam_softmax_kernel(labels_ref, emb_ref, w_ref, bias_ref, out_ref,
                        emb_n_ref, m_ref, l_ref, t_ref,
                        *, cos_m, sin_m, th, mm, scale, has_pad):
    c = pl.program_id(1)

    # --- once per batch tile: normalize embeddings (scale folded in), reset LSE ---
    @pl.when(c == 0)
    def _init():
        e = emb_ref[...].astype(jnp.float32)                       # (tb, E_pad)
        sumsq = jnp.sum(e * e, axis=1, keepdims=True)              # (tb, 1)
        # torch F.normalize: x / max(||x||, 1e-12)
        inv_norm = jax.lax.rsqrt(jnp.maximum(sumsq, 1e-24))
        # fold the softmax scale into the cached embeddings: the MXU then emits
        # scaled logits directly (saves a full (tb,tc) multiply every step)
        emb_n_ref[...] = (e * (scale * inv_norm)).astype(emb_n_ref.dtype)
        m_ref[...] = jnp.full_like(m_ref, -jnp.inf)
        l_ref[...] = jnp.zeros_like(l_ref)
        t_ref[...] = jnp.zeros_like(t_ref)

    # --- scaled cos_theta for this class tile: bf16 MXU feed, f32 accumulate ---
    s_logits = jnp.dot(emb_n_ref[...], w_ref[...],
                       preferred_element_type=jnp.float32)         # (tb, tc)
    tb, tc = s_logits.shape

    # --- target extraction with a LOCAL iota (per-row (tb,1) label shift) ---
    col = jax.lax.broadcasted_iota(jnp.int32, (tb, tc), 1)
    lab_local = labels_ref[...] - c * tc                           # (tb, 1)
    onehot = col == lab_local                                      # (tb, tc) bool
    has_target = (lab_local >= 0) & (lab_local < tc)               # (tb, 1)
    s_target = jnp.sum(jnp.where(onehot, s_logits, 0.0),
                       axis=1, keepdims=True)                      # (tb,1) = scale*cos

    # --- additive angular margin on the (tb, 1) target only ---
    target_cos = s_target * (1.0 / scale)
    sin_t = jnp.sqrt(jnp.clip(1.0 - target_cos * target_cos, 0.0, 1.0))
    cos_marg = target_cos * cos_m - sin_t * sin_m
    cos_marg = jnp.where(target_cos - th > 0, cos_marg, target_cos - mm)
    s_target_m = scale * cos_marg                                  # <= s_target

    # --- mask padded class columns only when padding exists (static flag) ---
    if has_pad:
        s_logits = s_logits + bias_ref[...]                        # (1, tc) bcast add

    # --- online log-sum-exp across class tiles.  The margined target logit is
    #     never larger than the plain one, so the tile max stays a valid bound;
    #     the margin enters as a (tb,1) correction to the running sum-exp. ---
    tile_max = jnp.max(s_logits, axis=1, keepdims=True)            # (tb, 1)
    m_new = jnp.maximum(m_ref[...], tile_max)
    alpha = jnp.exp(m_ref[...] - m_new)
    l_new = alpha * l_ref[...] + jnp.sum(jnp.exp(s_logits - m_new),
                                         axis=1, keepdims=True)
    corr = jnp.where(has_target,
                     jnp.exp(s_target_m - m_new) - jnp.exp(s_target - m_new),
                     0.0)
    l_ref[...] = l_new + corr
    m_ref[...] = m_new
    t_ref[...] = t_ref[...] + jnp.where(has_target, s_target_m, 0.0)

    # --- finalize per-row cross-entropy at the last class tile ---
    @pl.when(c == pl.num_programs(1) - 1)
    def _finalize():
        out_ref[...] = m_ref[...] + jnp.log(l_ref[...]) - t_ref[...]


def aam_softmax_loss_prepared(embeddings, labels, w_prepared, pad_bias, plan,
                              scale_constant=15.0, margin=0.3):
    """AAM-softmax mean CE loss given a pre-prepared (E_pad, C_pad) classifier."""
    B, E = embeddings.shape
    tb, tc = plan.tb, plan.tc
    nb, nc = plan.B_pad // tb, plan.C_pad // tc

    emb = jnp.pad(embeddings, ((0, plan.B_pad - B), (0, plan.E_pad - E)))
    lab = jnp.pad(labels.reshape(B, 1).astype(jnp.int32),
                  ((0, plan.B_pad - B), (0, 0)))

    kernel = functools.partial(
        _aam_softmax_kernel,
        cos_m=math.cos(margin), sin_m=math.sin(margin),
        th=math.cos(math.pi - margin), mm=math.sin(math.pi - margin) * margin,
        scale=scale_constant, has_pad=plan.has_pad)

    per_row = pl.pallas_call(
        kernel,
        out_shape=jax.ShapeDtypeStruct((plan.B_pad, 1), jnp.float32),
        grid_spec=pltpu.PrefetchScalarGridSpec(
            num_scalar_prefetch=0,
            grid=(nb, nc),
            in_specs=[
                pl.BlockSpec((tb, 1), lambda b, c: (b, 0)),            # labels
                pl.BlockSpec((tb, plan.E_pad), lambda b, c: (b, 0)),   # embeddings
                pl.BlockSpec((plan.E_pad, tc), lambda b, c: (0, c)),   # bf16 weights (E,C)
                pl.BlockSpec((1, tc), lambda b, c: (0, c)),            # pad-mask bias row
            ],
            out_specs=pl.BlockSpec((tb, 1), lambda b, c: (b, 0)),
            scratch_shapes=[
                pltpu.VMEM((tb, plan.E_pad), jnp.bfloat16),  # scaled, normalized emb
                pltpu.VMEM((tb, 1), jnp.float32),            # running max
                pltpu.VMEM((tb, 1), jnp.float32),            # running sum-exp
                pltpu.VMEM((tb, 1), jnp.float32),            # margined target logit
            ]),
        compiler_params=pltpu.CompilerParams(
            dimension_semantics=("parallel", "arbitrary"),
            vmem_limit_bytes=plan.vmem_limit),
    )(lab, emb, w_prepared, pad_bias)

    # mean over the true batch rows (padded rows dropped here)
    return jnp.mean(per_row[:B, 0])


def aam_softmax_loss(embeddings, labels, weights, scale_constant=15.0, margin=0.3):
    """Convenience wrapper taking the PyTorch-layout (C, E) weight matrix.

    Training loops should hoist make_aam_plan / prepare_aam_weights out of the
    step function (one transpose+cast per weight update, not per call).
    """
    B, E = embeddings.shape
    C, _ = weights.shape
    plan = make_aam_plan(B, E, C, embeddings.dtype)
    w_prepared, pad_bias = prepare_aam_weights(weights, plan)
    return aam_softmax_loss_prepared(embeddings, labels, w_prepared, pad_bias, plan,
                                     scale_constant=scale_constant, margin=margin)


def _reference_loss(embeddings, labels, weights, scale_constant=15.0, margin=0.3):
    """Pure-JAX f32 reference mirroring the PyTorch module."""
    cos_m, sin_m = math.cos(margin), math.sin(margin)
    th = math.cos(math.pi - margin)
    mm = math.sin(math.pi - margin) * margin
    emb = embeddings / jnp.maximum(
        jnp.linalg.norm(embeddings, axis=1, keepdims=True), 1e-12)
    cos_theta = emb @ weights.T
    sin_theta = jnp.sqrt(jnp.clip(1.0 - cos_theta * cos_theta, 1e-40, 1.0))
    cos_margined = cos_theta * cos_m - sin_theta * sin_m
    cos_margined = jnp.where(cos_theta - th > 0, cos_margined, cos_theta - mm)
    onehot = jax.nn.one_hot(labels, weights.shape[0], dtype=jnp.float32)
    logits = scale_constant * (onehot * cos_margined + (1.0 - onehot) * cos_theta)
    logp = jax.nn.log_softmax(logits, axis=1)
    return -jnp.mean(jnp.sum(onehot * logp, axis=1))


if __name__ == "__main__":
    key = jax.random.PRNGKey(0)

    # --- test 1: module's nominal small shapes (single tile, convenience API) ---
    B, E, C = 8, 32, 16   # batch, embedding_size, num_class
    k_emb, k_w, k_lab, key = jax.random.split(key, 4)
    embeddings = jax.random.normal(k_emb, (B, E), dtype=jnp.float32)
    bound = 1.0 / math.sqrt(E)   # stand-in for nn.Linear(E, C).weight init
    weights = jax.random.uniform(k_w, (C, E), dtype=jnp.float32,
                                 minval=-bound, maxval=bound)
    labels = jax.random.randint(k_lab, (B,), 0, C, dtype=jnp.int32)

    loss = jax.block_until_ready(aam_softmax_loss(embeddings, labels, weights))
    ref = _reference_loss(embeddings, labels, weights)
    assert jnp.isfinite(loss), "loss is not finite"
    assert jnp.allclose(loss, ref, rtol=2e-2, atol=2e-2), (loss, ref)

    # --- test 2: non-aligned shapes, multi-class-tile LSE, prepared-weights API ---
    B2, E2, C2 = 20, 200, 300
    k_emb, k_w, k_lab, key = jax.random.split(key, 4)
    emb2 = jax.random.normal(k_emb, (B2, E2), dtype=jnp.float32)
    bound2 = 1.0 / math.sqrt(E2)
    w2 = jax.random.uniform(k_w, (C2, E2), dtype=jnp.float32,
                            minval=-bound2, maxval=bound2)
    lab2 = jax.random.randint(k_lab, (B2,), 0, C2, dtype=jnp.int32)

    plan2 = make_aam_plan(B2, E2, C2, emb2.dtype)
    w2_prep, bias2 = prepare_aam_weights(w2, plan2)     # hoisted (once per update)
    loss2 = jax.block_until_ready(
        aam_softmax_loss_prepared(emb2, lab2, w2_prep, bias2, plan2))
    ref2 = _reference_loss(emb2, lab2, w2)
    assert jnp.isfinite(loss2), "loss2 is not finite"
    assert jnp.allclose(loss2, ref2, rtol=2e-2, atol=2e-2), (loss2, ref2)

    print("KERNEL_OK")
</pallas_src>

<mosaic_0001>
module attributes {stable_mosaic.version = 11 : i64} {
  func.func @_aam_softmax_kernel(%arg0: i32, %arg1: i32, %arg2: memref<16x1xi32, #tpu.memory_space<vmem>>, %arg3: memref<16x128xf32, #tpu.memory_space<vmem>>, %arg4: memref<128x128xbf16, #tpu.memory_space<vmem>>, %arg5: memref<1x128xf32, #tpu.memory_space<vmem>>, %arg6: memref<16x1xf32, #tpu.memory_space<vmem>>, %arg7: memref<16x128xbf16, #tpu.memory_space<vmem>>, %arg8: memref<16x1xf32, #tpu.memory_space<vmem>>, %arg9: memref<16x1xf32, #tpu.memory_space<vmem>>, %arg10: memref<16x1xf32, #tpu.memory_space<vmem>>) attributes {dimension_semantics = [#tpu.dimension_semantics<parallel>, #tpu.dimension_semantics<arbitrary>], iteration_bounds = array<i64: 1, 1>, scalar_prefetch = 0 : i64, scratch_operands = 4 : i64, tpu.core_type = #tpu.core_type<tc>, window_params = [{transform_indices = @transform_0, window_bounds = array<i64: 16, 1>}, {transform_indices = @transform_1, window_bounds = array<i64: 16, 128>}, {transform_indices = @transform_2, window_bounds = array<i64: 128, 128>}, {transform_indices = @transform_3, window_bounds = array<i64: 1, 128>}, {transform_indices = @transform_4, window_bounds = array<i64: 16, 1>}]} {
    %c0_i32 = arith.constant 0 : i32
    %0 = arith.cmpi eq, %arg1, %c0_i32 : i32
    %1 = arith.extui %0 : i1 to i32
    %c0_i32_0 = arith.constant 0 : i32
    %2 = arith.cmpi ne, %1, %c0_i32_0 : i32
    scf.if %2 {
      %c0_42 = arith.constant 0 : index
      %c0_43 = arith.constant 0 : index
      %82 = vector.load %arg3[%c0_42, %c0_43] : memref<16x128xf32, #tpu.memory_space<vmem>>, vector<16x128xf32>
      %83 = arith.mulf %82, %82 : vector<16x128xf32>
      %cst_44 = arith.constant dense<0.000000e+00> : vector<16xf32>
      %84 = vector.multi_reduction <add>, %83, %cst_44 [1] : vector<16x128xf32> to vector<16xf32>
      %85 = vector.shape_cast %84 : vector<16xf32> to vector<16x1xf32>
      %cst_45 = arith.constant 1.000000e-24 : f32
      %86 = vector.broadcast %cst_45 : f32 to vector<16x1xf32>
      %87 = arith.maximumf %85, %86 : vector<16x1xf32>
      %88 = math.rsqrt %87 : vector<16x1xf32>
      %cst_46 = arith.constant 1.500000e+01 : f32
      %89 = vector.broadcast %cst_46 : f32 to vector<16x1xf32>
      %90 = arith.mulf %89, %88 : vector<16x1xf32>
      %91 = vector.broadcast %90 : vector<16x1xf32> to vector<16x128xf32>
      %92 = arith.mulf %82, %91 : vector<16x128xf32>
      %93 = arith.truncf %92 : vector<16x128xf32> to vector<16x128xbf16>
      %c0_47 = arith.constant 0 : index
      %c0_48 = arith.constant 0 : index
      %94 = vector.load %arg7[%c0_47, %c0_48] : memref<16x128xbf16, #tpu.memory_space<vmem>>, vector<16x128xbf16>
      tpu.vector_store %arg7[%c0_47, %c0_48], %93 {strides = array<i32>} : memref<16x128xbf16, #tpu.memory_space<vmem>>, vector<16x128xbf16>,
      %cst_49 = arith.constant 0xFF800000 : f32
      %95 = vector.broadcast %cst_49 : f32 to vector<16x1xf32>
      %c0_50 = arith.constant 0 : index
      %c0_51 = arith.constant 0 : index
      %96 = vector.load %arg8[%c0_50, %c0_51] : memref<16x1xf32, #tpu.memory_space<vmem>>, vector<16x1xf32>
      tpu.vector_store %arg8[%c0_50, %c0_51], %95 {strides = array<i32>} : memref<16x1xf32, #tpu.memory_space<vmem>>, vector<16x1xf32>,
      %cst_52 = arith.constant 0.000000e+00 : f32
      %97 = vector.broadcast %cst_52 : f32 to vector<16x1xf32>
      %c0_53 = arith.constant 0 : index
      %c0_54 = arith.constant 0 : index
      %98 = vector.load %arg9[%c0_53, %c0_54] : memref<16x1xf32, #tpu.memory_space<vmem>>, vector<16x1xf32>
      tpu.vector_store %arg9[%c0_53, %c0_54], %97 {strides = array<i32>} : memref<16x1xf32, #tpu.memory_space<vmem>>, vector<16x1xf32>,
      %cst_55 = arith.constant 0.000000e+00 : f32
      %99 = vector.broadcast %cst_55 : f32 to vector<16x1xf32>
      %c0_56 = arith.constant 0 : index
      %c0_57 = arith.constant 0 : index
      %100 = vector.load %arg10[%c0_56, %c0_57] : memref<16x1xf32, #tpu.memory_space<vmem>>, vector<16x1xf32>
      tpu.vector_store %arg10[%c0_56, %c0_57], %99 {strides = array<i32>} : memref<16x1xf32, #tpu.memory_space<vmem>>, vector<16x1xf32>,
    } else {
    }
    %c0 = arith.constant 0 : index
    %c0_1 = arith.constant 0 : index
    %3 = vector.load %arg7[%c0, %c0_1] : memref<16x128xbf16, #tpu.memory_space<vmem>>, vector<16x128xbf16>
    %c0_2 = arith.constant 0 : index
    %c0_3 = arith.constant 0 : index
    %4 = vector.load %arg4[%c0_2, %c0_3] : memref<128x128xbf16, #tpu.memory_space<vmem>>, vector<128x128xbf16>
    %cst = arith.constant dense<0.000000e+00> : vector<16x128xf32>
    %5 = tpu.matmul %3, %4, %cst {dimension_numbers = #tpu.dot_dimension_numbers<[1], [0], [0], [1], [0, 0, 1, 1], [], []>} : vector<16x128xbf16>, vector<128x128xbf16>, vector<16x128xf32> -> vector<16x128xf32>
    %6 = tpu.iota {dimensions = array<i32: 1>} : vector<16x128xi32>
    %c0_4 = arith.constant 0 : index
    %c0_5 = arith.constant 0 : index
    %7 = vector.load %arg2[%c0_4, %c0_5] : memref<16x1xi32, #tpu.memory_space<vmem>>, vector<16x1xi32>
    %c128_i32 = arith.constant 128 : i32
    %8 = arith.muli %arg1, %c128_i32 : i32
    %9 = vector.broadcast %8 : i32 to vector<16x1xi32>
    %10 = arith.subi %7, %9 : vector<16x1xi32>
    %11 = vector.broadcast %10 : vector<16x1xi32> to vector<16x128xi32>
    %12 = arith.cmpi eq, %6, %11 : vector<16x128xi32>
    %c0_i32_6 = arith.constant 0 : i32
    %13 = vector.broadcast %c0_i32_6 : i32 to vector<16x1xi32>
    %14 = arith.cmpi sge, %10, %13 : vector<16x1xi32>
    %c128_i32_7 = arith.constant 128 : i32
    %15 = vector.broadcast %c128_i32_7 : i32 to vector<16x1xi32>
    %16 = arith.cmpi slt, %10, %15 : vector<16x1xi32>
    %17 = arith.andi %14, %16 : vector<16x1xi1>
    %cst_8 = arith.constant 0.000000e+00 : f32
    %18 = vector.broadcast %cst_8 : f32 to vector<16x128xf32>
    %19 = arith.select %12, %5, %18 : vector<16x128xi1>, vector<16x128xf32>
    %cst_9 = arith.constant dense<0.000000e+00> : vector<16xf32>
    %20 = vector.multi_reduction <add>, %19, %cst_9 [1] : vector<16x128xf32> to vector<16xf32>
    %21 = vector.shape_cast %20 : vector<16xf32> to vector<16x1xf32>
    %cst_10 = arith.constant 0.0666666701 : f32
    %22 = vector.broadcast %cst_10 : f32 to vector<16x1xf32>
    %23 = arith.mulf %21, %22 : vector<16x1xf32>
    %24 = arith.mulf %23, %23 : vector<16x1xf32>
    %cst_11 = arith.constant 1.000000e+00 : f32
    %25 = vector.broadcast %cst_11 : f32 to vector<16x1xf32>
    %26 = arith.subf %25, %24 : vector<16x1xf32>
    %cst_12 = arith.constant 0.000000e+00 : f32
    %cst_13 = arith.constant 1.000000e+00 : f32
    %27 = vector.broadcast %cst_12 : f32 to vector<16x1xf32>
    %28 = arith.maximumf %27, %26 : vector<16x1xf32>
    %29 = vector.broadcast %cst_13 : f32 to vector<16x1xf32>
    %30 = arith.minimumf %29, %28 : vector<16x1xf32>
    %31 = math.sqrt %30 : vector<16x1xf32>
    %cst_14 = arith.constant 0.955336511 : f32
    %32 = vector.broadcast %cst_14 : f32 to vector<16x1xf32>
    %33 = arith.mulf %23, %32 : vector<16x1xf32>
    %cst_15 = arith.constant 0.295520216 : f32
    %34 = vector.broadcast %cst_15 : f32 to vector<16x1xf32>
    %35 = arith.mulf %31, %34 : vector<16x1xf32>
    %36 = arith.subf %33, %35 : vector<16x1xf32>
    %cst_16 = arith.constant -0.955336511 : f32
    %37 = vector.broadcast %cst_16 : f32 to vector<16x1xf32>
    %38 = arith.subf %23, %37 : vector<16x1xf32>
    %cst_17 = arith.constant 0.000000e+00 : f32
    %39 = vector.broadcast %cst_17 : f32 to vector<16x1xf32>
    %40 = arith.cmpf ogt, %38, %39 : vector<16x1xf32>
    %cst_18 = arith.constant 0.0886560603 : f32
    %41 = vector.broadcast %cst_18 : f32 to vector<16x1xf32>
    %42 = arith.subf %23, %41 : vector<16x1xf32>
    %43 = arith.select %40, %36, %42 : vector<16x1xi1>, vector<16x1xf32>
    %cst_19 = arith.constant 1.500000e+01 : f32
    %44 = vector.broadcast %cst_19 : f32 to vector<16x1xf32>
    %45 = arith.mulf %44, %43 : vector<16x1xf32>
    %c0_20 = arith.constant 0 : index
    %c0_21 = arith.constant 0 : index
    %46 = vector.load %arg5[%c0_20, %c0_21] : memref<1x128xf32, #tpu.memory_space<vmem>>, vector<1x128xf32>
    %47 = vector.broadcast %46 : vector<1x128xf32> to vector<16x128xf32>
    %48 = arith.addf %5, %47 : vector<16x128xf32>
    %cst_22 = arith.constant dense<0xFF800000> : vector<16xf32>
    %49 = vector.multi_reduction <maximumf>, %48, %cst_22 [1] : vector<16x128xf32> to vector<16xf32>
    %50 = vector.shape_cast %49 : vector<16xf32> to vector<16x1xf32>
    %c0_23 = arith.constant 0 : index
    %c0_24 = arith.constant 0 : index
    %51 = vector.load %arg8[%c0_23, %c0_24] : memref<16x1xf32, #tpu.memory_space<vmem>>, vector<16x1xf32>
    %52 = arith.maximumf %51, %50 : vector<16x1xf32>
    %c0_25 = arith.constant 0 : index
    %c0_26 = arith.constant 0 : index
    %53 = vector.load %arg8[%c0_25, %c0_26] : memref<16x1xf32, #tpu.memory_space<vmem>>, vector<16x1xf32>
    %54 = arith.subf %53, %52 : vector<16x1xf32>
    %55 = math.exp %54 : vector<16x1xf32>
    %c0_27 = arith.constant 0 : index
    %c0_28 = arith.constant 0 : index
    %56 = vector.load %arg9[%c0_27, %c0_28] : memref<16x1xf32, #tpu.memory_space<vmem>>, vector<16x1xf32>
    %57 = arith.mulf %55, %56 : vector<16x1xf32>
    %58 = vector.broadcast %52 : vector<16x1xf32> to vector<16x128xf32>
    %59 = arith.subf %48, %58 : vector<16x128xf32>
    %60 = math.exp %59 : vector<16x128xf32>
    %cst_29 = arith.constant dense<0.000000e+00> : vector<16xf32>
    %61 = vector.multi_reduction <add>, %60, %cst_29 [1] : vector<16x128xf32> to vector<16xf32>
    %62 = vector.shape_cast %61 : vector<16xf32> to vector<16x1xf32>
    %63 = arith.addf %57, %62 : vector<16x1xf32>
    %64 = arith.subf %45, %52 : vector<16x1xf32>
    %65 = math.exp %64 : vector<16x1xf32>
    %66 = arith.subf %21, %52 : vector<16x1xf32>
    %67 = math.exp %66 : vector<16x1xf32>
    %68 = arith.subf %65, %67 : vector<16x1xf32>
    %cst_30 = arith.constant 0.000000e+00 : f32
    %69 = vector.broadcast %cst_30 : f32 to vector<16x1xf32>
    %70 = arith.select %17, %68, %69 : vector<16x1xi1>, vector<16x1xf32>
    %71 = arith.addf %63, %70 : vector<16x1xf32>
    %c0_31 = arith.constant 0 : index
    %c0_32 = arith.constant 0 : index
    %72 = vector.load %arg9[%c0_31, %c0_32] : memref<16x1xf32, #tpu.memory_space<vmem>>, vector<16x1xf32>
    tpu.vector_store %arg9[%c0_31, %c0_32], %71 {strides = array<i32>} : memref<16x1xf32, #tpu.memory_space<vmem>>, vector<16x1xf32>,
    %c0_33 = arith.constant 0 : index
    %c0_34 = arith.constant 0 : index
    %73 = vector.load %arg8[%c0_33, %c0_34] : memref<16x1xf32, #tpu.memory_space<vmem>>, vector<16x1xf32>
    tpu.vector_store %arg8[%c0_33, %c0_34], %52 {strides = array<i32>} : memref<16x1xf32, #tpu.memory_space<vmem>>, vector<16x1xf32>,
    %c0_35 = arith.constant 0 : index
    %c0_36 = arith.constant 0 : index
    %74 = vector.load %arg10[%c0_35, %c0_36] : memref<16x1xf32, #tpu.memory_space<vmem>>, vector<16x1xf32>
    %cst_37 = arith.constant 0.000000e+00 : f32
    %75 = vector.broadcast %cst_37 : f32 to vector<16x1xf32>
    %76 = arith.select %17, %45, %75 : vector<16x1xi1>, vector<16x1xf32>
    %77 = arith.addf %74, %76 : vector<16x1xf32>
    %c0_38 = arith.constant 0 : index
    %c0_39 = arith.constant 0 : index
    %78 = vector.load %arg10[%c0_38, %c0_39] : memref<16x1xf32, #tpu.memory_space<vmem>>, vector<16x1xf32>
    tpu.vector_store %arg10[%c0_38, %c0_39], %77 {strides = array<i32>} : memref<16x1xf32, #tpu.memory_space<vmem>>, vector<16x1xf32>,
    %c0_i32_40 = arith.constant 0 : i32
    %79 = arith.cmpi eq, %arg1, %c0_i32_40 : i32
    %80 = arith.extui %79 : i1 to i32
    %c0_i32_41 = arith.constant 0 : i32
    %81 = arith.cmpi ne, %80, %c0_i32_41 : i32
    scf.if %81 {
      %c0_42 = arith.constant 0 : index
      %c0_43 = arith.constant 0 : index
      %82 = vector.load %arg8[%c0_42, %c0_43] : memref<16x1xf32, #tpu.memory_space<vmem>>, vector<16x1xf32>
      %c0_44 = arith.constant 0 : index
      %c0_45 = arith.constant 0 : index
      %83 = vector.load %arg9[%c0_44, %c0_45] : memref<16x1xf32, #tpu.memory_space<vmem>>, vector<16x1xf32>
      %84 = math.log %83 : vector<16x1xf32>
      %85 = arith.addf %82, %84 : vector<16x1xf32>
      %c0_46 = arith.constant 0 : index
      %c0_47 = arith.constant 0 : index
      %86 = vector.load %arg10[%c0_46, %c0_47] : memref<16x1xf32, #tpu.memory_space<vmem>>, vector<16x1xf32>
      %87 = arith.subf %85, %86 : vector<16x1xf32>
      %c0_48 = arith.constant 0 : index
      %c0_49 = arith.constant 0 : index
      %88 = vector.load %arg6[%c0_48, %c0_49] : memref<16x1xf32, #tpu.memory_space<vmem>>, vector<16x1xf32>
      tpu.vector_store %arg6[%c0_48, %c0_49], %87 {strides = array<i32>} : memref<16x1xf32, #tpu.memory_space<vmem>>, vector<16x1xf32>,
    } else {
    }
    return
  }
  func.func @transform_0(%arg0: i32, %arg1: i32) -> (i32, i32) {
    %c0_i32 = arith.constant 0 : i32
    %c0_i32_0 = arith.constant 0 : i32
    return %arg0, %c0_i32 : i32, i32
  }
  func.func @transform_1(%arg0: i32, %arg1: i32) -> (i32, i32) {
    %c0_i32 = arith.constant 0 : i32
    %c0_i32_0 = arith.constant 0 : i32
    return %arg0, %c0_i32 : i32, i32
  }
  func.func @transform_2(%arg0: i32, %arg1: i32) -> (i32, i32) {
    %c0_i32 = arith.constant 0 : i32
    %c0_i32_0 = arith.constant 0 : i32
    return %c0_i32, %arg1 : i32, i32
  }
  func.func @transform_3(%arg0: i32, %arg1: i32) -> (i32, i32) {
    %c0_i32 = arith.constant 0 : i32
    %c0_i32_0 = arith.constant 0 : i32
    return %c0_i32, %arg1 : i32, i32
  }
  func.func @transform_4(%arg0: i32, %arg1: i32) -> (i32, i32) {
    %c0_i32 = arith.constant 0 : i32
    %c0_i32_0 = arith.constant 0 : i32
    return %arg0, %c0_i32 : i32, i32
  }
}

</mosaic_0001>

<bundles_post_ra>
// kernel: tpu_custom_call.1
= control target key start
LH: loop header
LB: loop body
LE: loop exit
PB: predicated region body
PF: predicated region fallthrough
CT: control target
= control target key end

     0   :  { %9 = vsyncpa [#allocation7], 0  ;;  %s474_s15 = smov [#allocation6]   ;;  %s587_s0 = inlined_call_operand.vmem [shape: s32[16,1], index: 0, kind: input, shape index: {}]   ;;  %s588_s1 = inlined_call_operand.vmem [shape: f32[16,128], index: 1, kind: input, shape index: {}]   ;;  %s589_s2 = inlined_call_operand.hbm [shape: bf16[128,128], index: 2, kind: input, shape index: {}]   ;;  %s590_s3 = inlined_call_operand.vmem [shape: f32[1,128], index: 3, kind: input, shape index: {}]   ;;  %s591_s4 = inlined_call_operand.vmem [shape: f32[16,1], index: 4, kind: output, shape index: {}]  }
   0x1   :  { %s19_s16 = sshll.u32 %s474_s15, 4  ;;  %s20_s16 = int_to_ptr.vmem [resolvable:$true] %s19_s16 }
   0x2   :  { %s460_s17 = scalar_lea.vmem %s20_s16, 1024  ;;  %p465_p1 = scmp.lt.s32.totalorder %s20_s16, %s20_s16 }
   0x3   :  { %p461_p0 = scmp.ne.s32.totalorder %s20_s16, %s460_s17  ;;  %p466_p2 = scmp.lt.s32.totalorder %s460_s17, %s460_s17 }
   0x5   :  { %p467_p3 = por %p466_p2, %p465_p1 }
   0x7   :  { %p468_p4 = pnand %p467_p3, %p461_p0 }
   0x9   :  { %471 = shalt.err (!%p468_p4)
}
   0xa   :  { %s475_s18 = smov 64   ;;  %s476_s19 = smov 4  }
   0xb   :  { %25 = dma.hbm_to_vmem [thread:$0]  %s589_s2, 1024, %s20_s16, [#allocation7], %s475_s18, %s475_s18, %s476_s19  }
   0xc   :  { %472 = dma.done.wait [#allocation7], 1024  }
   0xd   :  { %473 = vsyncadd [#allocation7], 4294966272  ;;  %v36_v0 = vld [vmem:[%s588_s1] sm:$0xff]  ;;  %v37_v1 = vld [vmem:[%s588_s1 + $0x8] sm:$0xff]  ;;  %v477_v5 = vmov 0.0   ;;  %vm478_vm0 = vmmov 0   ;;  %v182_v40 = vlaneseq }
   0xe   :  { %v38_v2 = vmul.f32 %v36_v0, %v36_v0  ;;  %v39_v3 = vmul.f32 %v37_v1, %v37_v1  ;;  %v415_v4 = vld [vmem:[#allocation6 + $0x38] sm:$0xff]   ;;  %386 = vmatprep.subr.bf16.mxu0 %v477_v5  ;;  %v416_v6 = vld [vmem:[#allocation6 + $0x30] sm:$0xff]   ;;  %v417_v7 = vld [vmem:[#allocation6 + $0x28] sm:$0xff]   ;;  %402 = vmatprep.mubr.msk.bf16.mxu0 %vm478_vm0, %v477_v5  ;;  %v479_v14 = vmov 0   ;;  %vm62_vm1 = vcmask 7168  }
   0xf   :  { %387 = vmatpush3.bf16.msra.mxu0 %v415_v4  ;;  %v418_v8 = vld [vmem:[#allocation6 + $0x20] sm:$0xff]   ;;  %v419_v9 = vld [vmem:[#allocation6 + $0x18] sm:$0xff]   ;;  %v420_v10 = vld [vmem:[#allocation6 + $0x10] sm:$0xff]   ;;  %413 = vset.pattern.permute.xlu0 %v479_v14  ;;  %v480_v27 = vmov -inf   ;;  %65 = vst.msk [vmem:[#allocation4] sm:$0xff] %vm62_vm1, %v477_v5  ;;  %v183_v43 = vand.u32 127, %v182_v40 }
  0x10   :  { %40 = vadd.xlane.f32.xlu0 %v38_v2  ;;  %388 = vmatprep.subr.bf16.mxu0 %v477_v5  ;;  %v421_v11 = vld [vmem:[#allocation6 + $0x8] sm:$0xff]   ;;  %v422_v12 = vld [vmem:[#allocation6] sm:$0xff]   ;;  %63 = vst.msk [vmem:[#allocation3] sm:$0xff] %vm62_vm1, %v480_v27  ;;  %64 = vst.msk [vmem:[#allocation3 + $0x8] sm:$0xff] %vm62_vm1, %v480_v27 }
  0x11   :  { %v518_v13 = vld [vmem:[%s587_s0] sm:$0xff]  ;;  %414 = vset.pattern.permute.xlu1 %v479_v14  ;;  %66 = vst.msk [vmem:[#allocation4 + $0x8] sm:$0xff] %vm62_vm1, %v477_v5  ;;  %67 = vst.msk [vmem:[#allocation5] sm:$0xff] %vm62_vm1, %v477_v5  ;;  %v185_v35 = vld [vmem:[%s587_s0 + $0x8] sm:$0xff] }
  0x12   :  { %68 = vst.msk [vmem:[#allocation5 + $0x8] sm:$0xff] %vm62_vm1, %v477_v5  ;;  %v369_v28 = vld [vmem:[%s590_s3] ss:$0 sm:$0xff]  ;;  %vm199_vm6 = vcmp.ge.s32.totalorder %v185_v35, 0  ;;  %vm201_vm7 = vcmp.lt.s32.totalorder %v185_v35, 128  ;;  %vm198_vm12 = vcmp.ge.s32.totalorder %v518_v13, 0 }
  0x13   :  { %389 = vmatpush3.bf16.msra.mxu0 %v416_v6  ;;  %vm550_vm9 = vmand %vm199_vm6, %vm201_vm7  ;;  %vm200_vm13 = vcmp.lt.s32.totalorder %v518_v13, 128 }
  0x14   :  { %42 = vadd.xlane.f32.xlu0 %v39_v3  ;;  %390 = vmatprep.subr.bf16.mxu0 %v477_v5  ;;  %vm562_vm15 = vmand %vm198_vm12, %vm200_vm13 }
  0x17   :  { %391 = vmatpush3.bf16.msra.mxu0 %v417_v7  ;;  %v533_v36 = vld [vmem:[#allocation3] sm:$0xff]  ;;  %v538_v39 = vld [vmem:[#allocation3 + $0x8] sm:$0xff] }
  0x18   :  { %392 = vmatprep.subr.bf16.mxu0 %v477_v5 }
  0x19   :  { %v323_v14 = vld [vmem:[#allocation5 + $0x8] sm:$0xff] }
  0x1b   :  { %393 = vmatpush3.bf16.msra.mxu0 %v418_v8 }
  0x1c   :  { %394 = vmatprep.subr.bf16.mxu0 %v477_v5 }
  0x1f   :  { %395 = vmatpush3.bf16.msra.mxu0 %v419_v9 }
  0x20   :  { %396 = vmatprep.subr.bf16.mxu0 %v477_v5 }
  0x23   :  { %397 = vmatpush3.bf16.msra.mxu0 %v420_v10 }
  0x24   :  { %398 = vmatprep.subr.bf16.mxu0 %v477_v5 }
  0x27   :  { %399 = vmatpush3.bf16.msra.mxu0 %v421_v11 }
  0x28   :  { %400 = vmatprep.subr.bf16.mxu0 %v477_v5 }
  0x2a   :  { %191 = vperm.xlu0 %413, %v518_v13  }
  0x2b   :  { %401 = vmatpush3.bf16.msra.mxu0 %v422_v12 }
  0x99   :  { %v41_v15 = vpop.xlane.xlu0 %40 }
  0x9a   :  { %v44_v16 = vmax.f32 %v41_v15, 1e-24 }
  0x9c   :  { %424 = vrsqrt.f32 %v44_v16 }
  0x9d   :  { %v43_v17 = vpop.xlane.xlu0 %42 }
  0x9e   :  { %v45_v18 = vmax.f32 %v43_v17, 1e-24 }
  0xa0   :  { %426 = vrsqrt.f32 %v45_v18 }
  0xa5   :  { %v192_v46 = vpop.permute.xlu0 %191 }
  0xa6   :  { %vm196_vm3 = vcmp.eq.s32.totalorder %v183_v43, %v192_v46  ;;  %v322_v46 = vld [vmem:[#allocation5] sm:$0xff] }
  0xa9   :  { %v425_v19 = vpop.eup %424 }
  0xaa   :  { %v48_v20 = vmul.f32 15.0, %v425_v19 }
  0xac   :  { %v50_v23 = vmul.f32 %v48_v20, %v36_v0 }
  0xad   :  { %v427_v21 = vpop.eup %426 }
  0xae   :  { %v49_v22 = vmul.f32 15.0, %v427_v21 }
  0xb0   :  { %v51_v24 = vmul.f32 %v49_v22, %v37_v1 }
  0xb2   :  { %v375_v25 = vpack.c.bf16 %v51_v24, %v50_v23 }
  0xb4   :  { %376 = vst [vmem:[#allocation2] sm:$0xff] %v375_v25  }
  0xbb   :  { %v423_v26 = vld [vmem:[#allocation2] sm:$0xff]  }
  0xbc   :  { %403 = vmatmul.mubr.bf16.vlgmr.msra.gmra.mxu0 %v423_v26 }
 0x17c   :  { %v175_v29 = vpop.f32.mrf.mxu0 }
 0x17d   :  { %v257_v30 = vadd.f32 %v369_v28, %v175_v29  ;;  %v204_v47 = vsel %vm196_vm3, %v175_v29, 0.0 }
 0x17e   :  { %v404_v31 = vpop.f32.mrf.mxu0 }
 0x17f   :  { %259 = vmax.xlane.f32.xlu1 %v257_v30 }
 0x180   :  { %v178_v32 = vpop.f32.mrf.mxu0 }
 0x181   :  { %v258_v33 = vadd.f32 %v369_v28, %v178_v32 }
 0x182   :  { %v405_v34 = vpop.f32.mrf.mxu0 }
 0x183   :  { %261 = vmax.xlane.f32.xlu1 %v258_v33 }
 0x194   :  { %194 = vperm.xlu1 %414, %v185_v35  }
 0x208   :  { %v260_v37 = vpop.xlane.xlu1 %259 }
 0x209   :  { %v536_v38 = vmax.f32 %v533_v36, %v260_v37 }
 0x20b   :  { %320 = vst.msk [vmem:[#allocation3] sm:$0xff] %vm62_vm1, %v536_v38  ;;  %279 = vperm.xlu1 %414, %v536_v38   ;;  %v267_v13 = vsub.f32 %v533_v36, %v536_v38 }
 0x20c   :  { %v262_v41 = vpop.xlane.xlu1 %261 }
 0x20d   :  { %v544_v42 = vmax.f32 %v538_v39, %v262_v41 }
 0x20f   :  { %321 = vst.msk [vmem:[#allocation3 + $0x8] sm:$0xff] %vm62_vm1, %v544_v42  ;;  %284 = vperm.xlu1 %414, %v544_v42  }
 0x210   :  { %v195_v44 = vpop.permute.xlu1 %194 }
 0x211   :  { %vm197_vm2 = vcmp.eq.s32.totalorder %v183_v43, %v195_v44 }
 0x212   :  { %v205_v45 = vsel %vm197_vm2, %v178_v32, 0.0 }
 0x213   :  { %208 = vadd.xlane.f32.xlu0 %v205_v45 }
 0x233   :  { %206 = vadd.xlane.f32.xlu1 %v204_v47 }
 0x286   :  { %v280_v48 = vpop.permute.xlu1 %279 }
 0x287   :  { %v287_v49 = vsub.f32 %v257_v30, %v280_v48 }
 0x289   :  { %v289_v50 = vmul.f32 1.442695, %v287_v49 }
 0x28a   :  { %v285_v51 = vpop.permute.xlu1 %284 }
 0x28b   :  { %428 = vpow2.f32 %v289_v50  ;;  %v288_v52 = vsub.f32 %v258_v33, %v285_v51 }
 0x28d   :  { %v291_v53 = vmul.f32 1.442695, %v288_v52  ;;  %v269_v52 = vmul.f32 1.442695, %v267_v13 }
 0x28f   :  { %430 = vpow2.f32 %v291_v53  ;;  %v268_v53 = vsub.f32 %v538_v39, %v544_v42 }
 0x298   :  { %v429_v54 = vpop.eup %428 }
 0x299   :  { %293 = vadd.xlane.f32.xlu1 %v429_v54 }
 0x29c   :  { %v431_v55 = vpop.eup %430  ;;  %v209_v56 = vpop.xlane.xlu0 %208 }
 0x29d   :  { %v211_v57 = vmul.f32 0.06666667, %v209_v56  ;;  %295 = vadd.xlane.f32.xlu1 %v431_v55  ;;  %v306_v8 = vsub.f32 %v209_v56, %v544_v42  ;;  %v271_v55 = vmul.f32 1.442695, %v268_v53 }
 0x29f   :  { %v213_v58 = vmul.f32 %v211_v57, %v211_v57  ;;  %v366_v3 = vadd.f32 0.9553365, %v211_v57  ;;  %v235_v4 = vmul.f32 0.9553365, %v211_v57  ;;  %v368_v7 = vadd.f32 -0.08865606, %v211_v57 }
 0x2a0   :  { %v309_v16 = vmul.f32 1.442695, %v306_v8  ;;  %v333_v8 = vld [vmem:[#allocation3] sm:$0xff] }
 0x2a1   :  { %v215_v59 = vsub.f32 1.0, %v213_v58  ;;  %vm243_vm8 = vcmp.gt.f32.partialorder %v366_v3, 0.0  ;;  %v273_v58 = vld [vmem:[#allocation4] sm:$0xff] }
 0x2a3   :  { %v217_v60 = vmax.f32 %v215_v59, 0.0 }
 0x2a5   :  { %v219_v61 = vmin.f32 %v217_v60, 1.0 }
 0x2a7   :  { %432 = vrsqrt.f32 %v219_v61  ;;  %vm229_vm4 = vcmp.eq.f32.partialorder %v219_v61, inf  ;;  %v232_v0 = vand.u32 2147483648, %v219_v61  ;;  %vm231_vm5 = vcmp.eq.f32.partialorder %v219_v61, 0.0 }
 0x2a8   :  { %434 = vpow2.f32 %v309_v16 }
 0x2b4   :  { %v433_v62 = vpop.eup %432 }
 0x2b5   :  { %v228_v63 = vmul.f32 %v433_v62, %v219_v61  ;;  %v435_v25 = vpop.eup %434 }
 0x2b7   :  { %v230_v1 = vsel %vm229_vm4, %v219_v61, %v228_v63 }
 0x2b8   :  { %v233_v2 = vsel %vm231_vm5, %v232_v0, %v230_v1 }
 0x2b9   :  { %v237_v5 = vmul.f32 0.29552022, %v233_v2 }
 0x2bb   :  { %v239_v6 = vsub.f32 %v235_v4, %v237_v5 }
 0x2bc   :  { %v207_v9 = vpop.xlane.xlu1 %206 }
 0x2bd   :  { %v210_v10 = vmul.f32 0.06666667, %v207_v9  ;;  %v247_v12 = vsel %vm243_vm8, %v239_v6, %v368_v7  ;;  %v305_v50 = vsub.f32 %v207_v9, %v536_v38 }
 0x2be   :  { %v249_v15 = vmul.f32 15.0, %v247_v12 }
 0x2bf   :  { %v212_v17 = vmul.f32 %v210_v10, %v210_v10  ;;  %v365_v34 = vadd.f32 0.9553365, %v210_v10  ;;  %v234_v35 = vmul.f32 0.9553365, %v210_v10  ;;  %v367_v41 = vadd.f32 -0.08865606, %v210_v10 }
 0x2c0   :  { %v300_v18 = vsub.f32 %v249_v15, %v544_v42  ;;  %v325_v19 = vsel %vm550_vm9, %v249_v15, 0.0  ;;  %v307_v54 = vmul.f32 1.442695, %v305_v50  ;;  %v334_v15 = vld [vmem:[#allocation3 + $0x8] sm:$0xff] }
 0x2c1   :  { %v214_v20 = vsub.f32 1.0, %v212_v17  ;;  %v327_v21 = vadd.f32 %v325_v19, %v323_v14  ;;  %vm242_vm14 = vcmp.gt.f32.partialorder %v365_v34, 0.0 }
 0x2c2   :  { %v303_v22 = vmul.f32 1.442695, %v300_v18 }
 0x2c3   :  { %v216_v23 = vmax.f32 %v214_v20, 0.0  ;;  %329 = vst.msk [vmem:[#allocation5 + $0x8] sm:$0xff] %vm62_vm1, %v327_v21 }
 0x2c4   :  { %436 = vpow2.f32 %v303_v22 }
 0x2c5   :  { %v218_v24 = vmin.f32 %v216_v23, 1.0 }
 0x2c7   :  { %438 = vrsqrt.f32 %v218_v24  ;;  %vm222_vm10 = vcmp.eq.f32.partialorder %v218_v24, inf  ;;  %v225_v31 = vand.u32 2147483648, %v218_v24  ;;  %vm224_vm11 = vcmp.eq.f32.partialorder %v218_v24, 0.0 }
 0x2ca   :  { %v344_v17 = vld [vmem:[#allocation5 + $0x8] sm:$0xff] }
 0x2d1   :  { %v437_v26 = vpop.eup %436 }
 0x2d2   :  { %v312_v27 = vsub.f32 %v437_v26, %v435_v25 }
 0x2d4   :  { %v439_v28 = vpop.eup %438  ;;  %v314_v29 = vsel %vm550_vm9, %v312_v27, 0.0 }
 0x2d5   :  { %v221_v30 = vmul.f32 %v439_v28, %v218_v24 }
 0x2d7   :  { %v223_v32 = vsel %vm222_vm10, %v218_v24, %v221_v30 }
 0x2d8   :  { %v226_v33 = vsel %vm224_vm11, %v225_v31, %v223_v32 }
 0x2d9   :  { %v236_v37 = vmul.f32 0.29552022, %v226_v33 }
 0x2db   :  { %v238_v40 = vsub.f32 %v234_v35, %v236_v37 }
 0x2dd   :  { %v246_v44 = vsel %vm242_vm14, %v238_v40, %v367_v41 }
 0x2de   :  { %v248_v45 = vmul.f32 15.0, %v246_v44 }
 0x2e0   :  { %v324_v47 = vsel %vm562_vm15, %v248_v45, 0.0  ;;  %v299_v49 = vsub.f32 %v248_v45, %v536_v38  ;;  %v274_v38 = vld [vmem:[#allocation4 + $0x8] sm:$0xff] }
 0x2e1   :  { %v326_v48 = vadd.f32 %v324_v47, %v322_v46 }
 0x2e2   :  { %v301_v51 = vmul.f32 1.442695, %v299_v49 }
 0x2e3   :  { %328 = vst.msk [vmem:[#allocation5] sm:$0xff] %vm62_vm1, %v326_v48 }
 0x2e4   :  { %440 = vpow2.f32 %v301_v51 }
 0x2e5   :  { %442 = vpow2.f32 %v269_v52 }
 0x2e6   :  { %444 = vpow2.f32 %v307_v54 }
 0x2e7   :  { %446 = vpow2.f32 %v271_v55 }
 0x2ea   :  { %v343_v11 = vld [vmem:[#allocation5] sm:$0xff] }
 0x2f1   :  { %v441_v56 = vpop.eup %440 }
 0x2f2   :  { %v443_v57 = vpop.eup %442 }
 0x2f3   :  { %v445_v59 = vpop.eup %444  ;;  %v275_v61 = vmul.f32 %v443_v57, %v273_v58 }
 0x2f4   :  { %v311_v60 = vsub.f32 %v441_v56, %v445_v59  ;;  %v447_v36 = vpop.eup %446 }
 0x2f5   :  { %v276_v42 = vmul.f32 %v447_v36, %v274_v38 }
 0x2f6   :  { %v313_v0 = vsel %vm562_vm15, %v311_v60, 0.0 }
 0x322   :  { %v294_v62 = vpop.xlane.xlu1 %293 }
 0x323   :  { %v297_v63 = vadd.f32 %v294_v62, %v275_v61 }
 0x325   :  { %v315_v39 = vadd.f32 %v313_v0, %v297_v63 }
 0x326   :  { %v296_v1 = vpop.xlane.xlu1 %295 }
 0x327   :  { %318 = vst.msk [vmem:[#allocation4] sm:$0xff] %vm62_vm1, %v315_v39  ;;  %v298_v2 = vadd.f32 %v296_v1, %v276_v42 }
 0x329   :  { %v316_v3 = vadd.f32 %v314_v29, %v298_v2 }
 0x32b   :  { %319 = vst.msk [vmem:[#allocation4 + $0x8] sm:$0xff] %vm62_vm1, %v316_v3 }
 0x32e   :  { %v335_v4 = vld [vmem:[#allocation4] sm:$0xff] }
 0x32f   :  { %448 = vlog2.f32 %v335_v4 }
 0x332   :  { %v336_v5 = vld [vmem:[#allocation4 + $0x8] sm:$0xff] }
 0x333   :  { %450 = vlog2.f32 %v336_v5 }
 0x33c   :  { %v449_v6 = vpop.eup %448 }
 0x33d   :  { %v338_v7 = vmul.f32 0.6931472, %v449_v6 }
 0x33f   :  { %v341_v9 = vadd.f32 %v338_v7, %v333_v8 }
 0x340   :  { %v451_v10 = vpop.eup %450 }
 0x341   :  { %v345_v12 = vsub.f32 %v341_v9, %v343_v11  ;;  %v340_v14 = vmul.f32 0.6931472, %v451_v10 }
 0x343   :  { %347 = vst.msk [vmem:[%s591_s4] sm:$0xff] %vm62_vm1, %v345_v12  ;;  %v342_v16 = vadd.f32 %v340_v14, %v334_v15 }
 0x345   :  { %v346_v18 = vsub.f32 %v342_v16, %v344_v17 }
 0x347   :  { %348 = vst.msk [vmem:[%s591_s4 + $0x8] sm:$0xff] %vm62_vm1, %v346_v18 }
 0x348   :  { %353 = vsyncpa [#allocation7], 1 }

</bundles_post_ra>
